<compile_context>
chip_gen: v5e
topology: v5e:2x2
jax: 0.10.0
libtpu: 0.0.40
codegen_flags: <defaults>
</compile_context>

<pallas_src>
import math
from functools import partial

import jax
import jax.numpy as jnp
from jax.experimental import pallas as pl
from jax.experimental.pallas import tpu as pltpu

_LN2 = 0.6931471805599453


# ----------------------------- Pallas kernel -------------------------------- #
def _logcosh_rowsum_kernel(x_ref, y_ref, o_ref, *, a, eps, d, td, mask_d):
    """Accumulate per-row sums of log(cosh(a*(x-y)) + eps) over D tiles."""
    k = pl.program_id(1)

    @pl.when(k == 0)
    def _init():
        o_ref[...] = jnp.zeros_like(o_ref)

    x = x_ref[...].astype(jnp.float32)
    y = y_ref[...].astype(jnp.float32)
    z = jnp.abs((x - y) * a)
    # Exact: cosh(z) + eps = (e^|z| / 2) * (1 + t^2 + 2*eps*t), t = e^-|z|
    # -> log(cosh(z)+eps) = |z| - ln2 + log1p(t*(t + 2*eps)).  2 EUP ops, no
    # overflow (differs from torch only where torch.cosh overflows to inf).
    t = jnp.exp(-z)
    v = z + jnp.log1p(t * (t + 2.0 * eps)) - _LN2
    if mask_d:
        # Ragged last D tile: zero out-of-range lanes so they don't pollute
        # the row sums (garbage could be inf/NaN -> use select, not multiply).
        col = k * td + jax.lax.broadcasted_iota(jnp.int32, v.shape, 1)
        v = jnp.where(col < d, v, 0.0)
    o_ref[...] += jnp.sum(v, axis=-1, keepdims=True)


# ------------------------------ tiling logic -------------------------------- #
def _round_up(x, m):
    return -(-x // m) * m


def _pick_tiles(rows, d):
    """Pick (tm, td) block sizes.

    ~3 MiB of f32 per input block -> 2 inputs x 2 pipeline buffers ~= 12 MiB
    resident, comfortably inside scoped VMEM on v5e/v6e (with the explicit
    32 MiB limit below) and within v7x's tighter 64 MiB physical VMEM.
    """
    budget = 3 << 20                              # bytes per f32 input block
    rows8 = _round_up(max(rows, 1), 8)
    if 8 * d * 4 <= budget:
        td = d                                    # full last dim in one block
        tm = (budget // (d * 4)) // 8 * 8
        tm = min(tm, 8192, rows8)
        if rows >= 16:
            # >= 2 parallel row-grid steps so both v7x TensorCores get work.
            tm = min(tm, _round_up(-(-rows // 2), 8))
        tm = max(tm, 8)
    else:
        # Very long last dim: tile D (multiple of 128) and keep 8-row blocks.
        td = min(_round_up(d, 128), (budget // (8 * 4)) // 128 * 128)
        tm = max(8, min((budget // (td * 4)) // 8 * 8, rows8))
    return tm, td


# ------------------------------ JAX glue ------------------------------------ #
@partial(jax.jit, static_argnames=("a", "eps", "reduction"))
def _logcosh_loss(x, y, *, a, eps, reduction):
    shape = x.shape
    d = int(shape[-1])
    rows = int(math.prod(shape[:-1]))

    # Native dtype into the kernel; cast happens on-chip (saves an HBM pass
    # for bf16/f16 inputs).
    x2d = x.reshape(rows, d)
    y2d = y.reshape(rows, d)

    tm, td = _pick_tiles(rows, d)
    num_row_tiles = -(-rows // tm)
    num_d_tiles = -(-d // td)
    mask_d = (d % td) != 0

    row_sums = pl.pallas_call(
        partial(_logcosh_rowsum_kernel, a=float(a), eps=float(eps),
                d=d, td=td, mask_d=mask_d),
        out_shape=jax.ShapeDtypeStruct((rows, 1), jnp.float32),
        grid_spec=pltpu.PrefetchScalarGridSpec(
            num_scalar_prefetch=0,
            grid=(num_row_tiles, num_d_tiles),
            in_specs=[
                pl.BlockSpec((tm, td), lambda i, k: (i, k)),
                pl.BlockSpec((tm, td), lambda i, k: (i, k)),
            ],
            out_specs=pl.BlockSpec((tm, 1), lambda i, k: (i, 0)),
        ),
        compiler_params=pltpu.CompilerParams(
            dimension_semantics=("parallel", "arbitrary"),
            vmem_limit_bytes=32 * 1024 * 1024,
        ),
    )(x2d, y2d)

    # per-row loss = (1/a) * mean over last dim of log(cosh(a*(x-y)) + eps)
    losses = row_sums[:, 0] * (1.0 / (a * d))
    if reduction == "mean":
        return jnp.mean(losses)
    if reduction == "sum":
        return jnp.sum(losses)
    return losses.reshape(shape[:-1])             # reduction == 'none'


class LogCoshLossPallas:
    """Pallas port of auraloss LogCoshLoss forward."""

    def __init__(self, a=1.0, eps=1e-08, reduction="mean"):
        self.a = float(a)
        self.eps = float(eps)
        self.reduction = reduction

    def __call__(self, input, target):
        return _logcosh_loss(input, target, a=self.a, eps=self.eps,
                             reduction=self.reduction)


# ------------------------------ self-test ----------------------------------- #
if __name__ == "__main__":
    key = jax.random.PRNGKey(0)
    kx, ky = jax.random.split(key)

    # (batch, nchs, seq) — small audio-shaped inputs
    x = jax.random.normal(kx, (2, 4, 256), dtype=jnp.float32)
    y = jax.random.normal(ky, (2, 4, 256), dtype=jnp.float32)

    eps = 1e-08
    loss_fn = LogCoshLossPallas()                 # a=1.0, eps=1e-8, 'mean'
    loss = jax.block_until_ready(loss_fn(x, y))
    ref = jnp.mean(jnp.log(jnp.cosh(x - y) + eps))
    assert jnp.isfinite(loss), "mean loss is not finite"
    assert jnp.allclose(loss, ref, rtol=1e-4, atol=1e-6), (float(loss), float(ref))

    # reduction='none' on a ragged (rows not multiple of 8) shape
    kx2, ky2 = jax.random.split(ky)
    x2 = jax.random.normal(kx2, (3, 5, 200), dtype=jnp.float32)
    y2 = jax.random.normal(ky2, (3, 5, 200), dtype=jnp.float32)
    loss_none = jax.block_until_ready(
        LogCoshLossPallas(a=0.5, reduction="none")(x2, y2))
    ref_none = (1.0 / 0.5) * jnp.mean(
        jnp.log(jnp.cosh(0.5 * (x2 - y2)) + eps), axis=-1)
    assert loss_none.shape == (3, 5)
    assert jnp.all(jnp.isfinite(loss_none))
    assert jnp.allclose(loss_none, ref_none, rtol=1e-4, atol=1e-6)

    # bf16 inputs: cast happens inside the kernel
    xb = x.astype(jnp.bfloat16)
    yb = y.astype(jnp.bfloat16)
    loss_bf16 = jax.block_until_ready(loss_fn(xb, yb))
    ref_bf16 = jnp.mean(jnp.log(
        jnp.cosh(xb.astype(jnp.float32) - yb.astype(jnp.float32)) + eps))
    assert jnp.allclose(loss_bf16, ref_bf16, rtol=1e-3, atol=1e-5)

    print("KERNEL_OK")
</pallas_src>

<mosaic_0001>
module attributes {stable_mosaic.version = 11 : i64} {
  func.func @_logcosh_rowsum_kernel(%arg0: i32, %arg1: i32, %arg2: memref<8x256xf32, #tpu.memory_space<vmem>>, %arg3: memref<8x256xf32, #tpu.memory_space<vmem>>, %arg4: memref<8x1xf32, #tpu.memory_space<vmem>>) attributes {dimension_semantics = [#tpu.dimension_semantics<parallel>, #tpu.dimension_semantics<arbitrary>], iteration_bounds = array<i64: 1, 1>, scalar_prefetch = 0 : i64, scratch_operands = 0 : i64, tpu.core_type = #tpu.core_type<tc>, window_params = [{transform_indices = @transform_0, window_bounds = array<i64: 8, 256>}, {transform_indices = @transform_1, window_bounds = array<i64: 8, 256>}, {transform_indices = @transform_2, window_bounds = array<i64: 8, 1>}]} {
    %c0_i32 = arith.constant 0 : i32
    %0 = arith.cmpi eq, %arg1, %c0_i32 : i32
    %1 = arith.extui %0 : i1 to i32
    %c0_i32_0 = arith.constant 0 : i32
    %2 = arith.cmpi ne, %1, %c0_i32_0 : i32
    scf.if %2 {
      %cst_12 = arith.constant 0.000000e+00 : f32
      %24 = vector.broadcast %cst_12 : f32 to vector<8x1xf32>
      %c0_13 = arith.constant 0 : index
      %c0_14 = arith.constant 0 : index
      %25 = vector.load %arg4[%c0_13, %c0_14] : memref<8x1xf32, #tpu.memory_space<vmem>>, vector<8x1xf32>
      tpu.vector_store %arg4[%c0_13, %c0_14], %24 {strides = array<i32>} : memref<8x1xf32, #tpu.memory_space<vmem>>, vector<8x1xf32>,
    } else {
    }
    %c0 = arith.constant 0 : index
    %c0_1 = arith.constant 0 : index
    %3 = vector.load %arg2[%c0, %c0_1] : memref<8x256xf32, #tpu.memory_space<vmem>>, vector<8x256xf32>
    %c0_2 = arith.constant 0 : index
    %c0_3 = arith.constant 0 : index
    %4 = vector.load %arg3[%c0_2, %c0_3] : memref<8x256xf32, #tpu.memory_space<vmem>>, vector<8x256xf32>
    %5 = arith.subf %3, %4 : vector<8x256xf32>
    %cst = arith.constant 1.000000e+00 : f32
    %6 = vector.broadcast %cst : f32 to vector<8x256xf32>
    %7 = arith.mulf %5, %6 : vector<8x256xf32>
    %8 = math.absf %7 : vector<8x256xf32>
    %cst_4 = arith.constant 0.000000e+00 : f32
    %9 = vector.broadcast %cst_4 : f32 to vector<8x256xf32>
    %10 = arith.subf %9, %8 : vector<8x256xf32>
    %11 = math.exp %10 : vector<8x256xf32>
    %cst_5 = arith.constant 2.000000e-08 : f32
    %12 = vector.broadcast %cst_5 : f32 to vector<8x256xf32>
    %13 = arith.addf %11, %12 : vector<8x256xf32>
    %14 = arith.mulf %11, %13 : vector<8x256xf32>
    %15 = math.log1p %14 : vector<8x256xf32>
    %16 = arith.addf %8, %15 : vector<8x256xf32>
    %cst_6 = arith.constant 0.693147182 : f32
    %17 = vector.broadcast %cst_6 : f32 to vector<8x256xf32>
    %18 = arith.subf %16, %17 : vector<8x256xf32>
    %c0_7 = arith.constant 0 : index
    %c0_8 = arith.constant 0 : index
    %19 = vector.load %arg4[%c0_7, %c0_8] : memref<8x1xf32, #tpu.memory_space<vmem>>, vector<8x1xf32>
    %cst_9 = arith.constant dense<0.000000e+00> : vector<8xf32>
    %20 = vector.multi_reduction <add>, %18, %cst_9 [1] : vector<8x256xf32> to vector<8xf32>
    %21 = vector.shape_cast %20 : vector<8xf32> to vector<8x1xf32>
    %22 = arith.addf %19, %21 : vector<8x1xf32>
    %c0_10 = arith.constant 0 : index
    %c0_11 = arith.constant 0 : index
    %23 = vector.load %arg4[%c0_10, %c0_11] : memref<8x1xf32, #tpu.memory_space<vmem>>, vector<8x1xf32>
    tpu.vector_store %arg4[%c0_10, %c0_11], %22 {strides = array<i32>} : memref<8x1xf32, #tpu.memory_space<vmem>>, vector<8x1xf32>,
    return
  }
  func.func @transform_0(%arg0: i32, %arg1: i32) -> (i32, i32) {
    %c0_i32 = arith.constant 0 : i32
    return %arg0, %arg1 : i32, i32
  }
  func.func @transform_1(%arg0: i32, %arg1: i32) -> (i32, i32) {
    %c0_i32 = arith.constant 0 : i32
    return %arg0, %arg1 : i32, i32
  }
  func.func @transform_2(%arg0: i32, %arg1: i32) -> (i32, i32) {
    %c0_i32 = arith.constant 0 : i32
    %c0_i32_0 = arith.constant 0 : i32
    return %arg0, %c0_i32 : i32, i32
  }
}

</mosaic_0001>

<bundles_post_ra>
// kernel: _logcosh_loss.1
= control target key start
LH: loop header
LB: loop body
LE: loop exit
PB: predicated region body
PF: predicated region fallthrough
CT: control target
= control target key end

     0   :  { %vm15_vm0 = vcmask 7168   ;;  %v79_v12 = vmov 0.0   ;;  %s118_s0 = inlined_call_operand.vmem [shape: f32[8,256], index: 0, kind: input, shape index: {}]   ;;  %s119_s1 = inlined_call_operand.vmem [shape: f32[8,256], index: 1, kind: input, shape index: {}]   ;;  %s120_s2 = inlined_call_operand.vmem [shape: f32[8,1], index: 2, kind: output, shape index: {}]  }
   0x1   :  { %v17_v0 = vld [vmem:[%s118_s0] sm:$0xff]  ;;  %v18_v1 = vld [vmem:[%s118_s0 + $0x8] sm:$0xff]  ;;  %16 = vst.msk [vmem:[%s120_s2] sm:$0xff] %vm15_vm0, %v79_v12 }
   0x2   :  { %v19_v2 = vld [vmem:[%s119_s1] sm:$0xff]  ;;  %v20_v3 = vld [vmem:[%s119_s1 + $0x8] sm:$0xff] }
   0x3   :  { %v21_v4 = vsub.f32 %v17_v0, %v19_v2  ;;  %v22_v5 = vsub.f32 %v18_v1, %v20_v3 }
   0x5   :  { %v23_v6 = vand.u32 2147483647, %v21_v4  ;;  %v24_v7 = vand.u32 2147483647, %v22_v5 }
   0x7   :  { %v25_v8 = vsub.f32 0.0, %v23_v6  ;;  %v26_v9 = vsub.f32 0.0, %v24_v7 }
   0x8   :  { %v57_v40 = vld [vmem:[%s120_s2] sm:$0xff] }
   0x9   :  { %v27_v10 = vmul.f32 1.442695, %v25_v8  ;;  %v29_v11 = vmul.f32 1.442695, %v26_v9 }
   0xb   :  { %71 = vpow2.f32 %v27_v10 }
   0xc   :  { %73 = vpow2.f32 %v29_v11 }
  0x11   :  { %v72_v13 = vpop.eup %71 }
  0x12   :  { %v74_v14 = vpop.eup %73  ;;  %v31_v15 = vadd.f32 2e-08, %v72_v13 }
  0x13   :  { %v32_v16 = vadd.f32 2e-08, %v74_v14 }
  0x14   :  { %v33_v17 = vmul.f32 %v72_v13, %v31_v15 }
  0x15   :  { %v34_v18 = vmul.f32 %v74_v14, %v32_v16 }
  0x16   :  { %v35_v19 = vadd.f32 1.0, %v33_v17  ;;  %v38_v20 = vmul.f32 -0.5, %v33_v17  ;;  %v41_v24 = vand.u32 2147483647, %v33_v17 }
  0x17   :  { %v44_v21 = vadd.f32 1.0, %v34_v18  ;;  %v47_v22 = vmul.f32 -0.5, %v34_v18  ;;  %v50_v26 = vand.u32 2147483647, %v34_v18 }
  0x18   :  { %75 = vlog2.f32 %v35_v19  ;;  %v39_v23 = vadd.f32 1.0, %v38_v20  ;;  %vm42_vm1 = vcmp.lt.f32.partialorder %v41_v24, 0.0004427343 }
  0x19   :  { %77 = vlog2.f32 %v44_v21  ;;  %v48_v25 = vadd.f32 1.0, %v47_v22  ;;  %vm51_vm2 = vcmp.lt.f32.partialorder %v50_v26, 0.0004427343 }
  0x1a   :  { %v40_v27 = vmul.f32 %v39_v23, %v33_v17 }
  0x1b   :  { %v49_v29 = vmul.f32 %v48_v25, %v34_v18 }
  0x1e   :  { %v76_v28 = vpop.eup %75 }
  0x1f   :  { %v78_v30 = vpop.eup %77  ;;  %v37_v31 = vmul.f32 0.6931472, %v76_v28 }
  0x20   :  { %v46_v32 = vmul.f32 0.6931472, %v78_v30 }
  0x21   :  { %v43_v33 = vsel %vm42_vm1, %v40_v27, %v37_v31 }
  0x22   :  { %v52_v34 = vsel %vm51_vm2, %v49_v29, %v46_v32  ;;  %v53_v35 = vadd.f32 %v43_v33, %v23_v6 }
  0x23   :  { %v54_v36 = vadd.f32 %v52_v34, %v24_v7 }
  0x24   :  { %v68_v37 = vadd.f32 -0.6931472, %v53_v35 }
  0x25   :  { %v69_v38 = vadd.f32 -0.6931472, %v54_v36 }
  0x27   :  { %v58_v39 = vadd.f32 %v69_v38, %v68_v37 }
  0x29   :  { %59 = vadd.xlane.f32.xlu0 %v58_v39 }
  0x9c   :  { %v60_v41 = vpop.xlane.xlu0 %59 }
  0x9d   :  { %v61_v42 = vadd.f32 %v60_v41, %v57_v40 }
  0x9f   :  { %63 = vst.msk [vmem:[%s120_s2] sm:$0xff] %vm15_vm0, %v61_v42 }

</bundles_post_ra>
